<compile_context>
chip_gen: v7x
topology: tpu7x:2x2x1
jax: 0.10.0
libtpu: 0.0.40
codegen_flags: <defaults>
</compile_context>

<pallas_src>
import jax
import jax.numpy as jnp
import numpy as np
from jax import lax
from jax.experimental import pallas as pl
from jax.experimental.pallas import tpu as pltpu


def _divmod_kernel(x_ref, out_ref):
    """out_ref has a leading axis of size 2: [0]=quotient, [1]=remainder."""
    x = x_ref[...]
    # Trunc division by 4: negative x gets +3 bias so the shift rounds
    # toward zero.  Correct for INT32_MIN (no abs overflow).
    bias = lax.shift_right_arithmetic(x, jnp.int32(31)) & jnp.int32(3)
    q = lax.shift_right_arithmetic(x + bias, jnp.int32(2))
    out_ref[0] = q
    out_ref[1] = x - lax.shift_left(q, jnp.int32(2))


# Production tiling: 2048 rows x 128 lanes of int32 = 1 MiB input block,
# 2 MiB stacked output block.  Double-buffered live set = 2*1 + 2*2 = 6 MiB,
# comfortably inside v7x's 64 MiB physical / 32 MiB default scoped VMEM while
# still amortizing the ~0.35 us/step grid overhead (>=85% of HBM roofline).
_BLOCK_ROWS = 2048
_LANES = 128


def divmod_model_forward(x):
    """x: int32 array of shape (B, C, H, W). Returns (y0, remainder)."""
    orig_shape = x.shape
    n = x.size
    assert n % _LANES == 0, "demo assumes total elements divisible by 128"
    rows = n // _LANES
    x2 = x.reshape(rows, _LANES)

    if rows <= 2 * _BLOCK_ROWS:
        # Small / demo sizes: single un-gridded invocation, whole lane-dense
        # slab resident in VMEM, one merged writeback.  Any grid scaffolding
        # here is pure fixed overhead.
        out = pl.pallas_call(
            _divmod_kernel,
            out_shape=jax.ShapeDtypeStruct((2, rows, _LANES), x2.dtype),
            in_specs=[pl.BlockSpec(memory_space=pltpu.MemorySpace.VMEM)],
            out_specs=pl.BlockSpec(memory_space=pltpu.MemorySpace.VMEM),
        )(x2)
    else:
        # Production sizes: tile the row axis with >=1 MiB blocks.  The row
        # axis is embarrassingly parallel -> "parallel" semantics shard it
        # across v7x's two TensorCores; no effect (and no harm) on v5e/v6e.
        grid = (pl.cdiv(rows, _BLOCK_ROWS),)
        out = pl.pallas_call(
            _divmod_kernel,
            out_shape=jax.ShapeDtypeStruct((2, rows, _LANES), x2.dtype),
            grid_spec=pltpu.PrefetchScalarGridSpec(
                num_scalar_prefetch=0,
                grid=grid,
                in_specs=[
                    pl.BlockSpec((_BLOCK_ROWS, _LANES), lambda i: (i, 0)),
                ],
                out_specs=pl.BlockSpec(
                    (2, _BLOCK_ROWS, _LANES), lambda i: (0, i, 0)
                ),
            ),
            compiler_params=pltpu.CompilerParams(
                dimension_semantics=("parallel",),
                vmem_limit_bytes=32 << 20,  # plenty for 6 MiB live set
            ),
        )(x2)

    y0 = out[0].reshape(orig_shape)
    rem = out[1].reshape(orig_shape)
    return y0, rem


if __name__ == "__main__":
    key = jax.random.PRNGKey(0)
    # Small NCHW-ish input, signed integers to exercise trunc-toward-zero.
    x = jax.random.randint(
        key, (2, 4, 16, 16), minval=-100, maxval=100, dtype=jnp.int32
    )

    y0, rem = divmod_model_forward(x)
    jax.block_until_ready((y0, rem))

    # Pure-integer reference (exact over the full int32 range).
    x64 = np.asarray(x, dtype=np.int64)
    q_ref = np.sign(x64) * (np.abs(x64) // 4)
    rem_ref = x64 - q_ref * 4
    assert np.array_equal(np.asarray(y0, dtype=np.int64), q_ref), \
        "quotient mismatch"
    assert np.array_equal(np.asarray(rem, dtype=np.int64), rem_ref), \
        "remainder mismatch"

    print("KERNEL_OK")
</pallas_src>

<mosaic_0001>
module attributes {stable_mosaic.version = 11 : i64} {
  func.func @_divmod_kernel(%arg0: memref<16x128xi32, #tpu.memory_space<vmem>>, %arg1: memref<2x16x128xi32, #tpu.memory_space<vmem>>) attributes {dimension_semantics = [], scalar_prefetch = 0 : i64, scratch_operands = 0 : i64, tpu.core_type = #tpu.core_type<tc>} {
    %c0 = arith.constant 0 : index
    %c0_0 = arith.constant 0 : index
    %0 = vector.load %arg0[%c0, %c0_0] : memref<16x128xi32, #tpu.memory_space<vmem>>, vector<16x128xi32>
    %c31_i32 = arith.constant 31 : i32
    %1 = vector.broadcast %c31_i32 : i32 to vector<16x128xi32>
    %2 = arith.shrsi %0, %1 : vector<16x128xi32>
    %c3_i32 = arith.constant 3 : i32
    %3 = vector.broadcast %c3_i32 : i32 to vector<16x128xi32>
    %4 = arith.andi %2, %3 : vector<16x128xi32>
    %5 = arith.addi %0, %4 : vector<16x128xi32>
    %c2_i32 = arith.constant 2 : i32
    %6 = vector.broadcast %c2_i32 : i32 to vector<16x128xi32>
    %7 = arith.shrsi %5, %6 : vector<16x128xi32>
    %c0_1 = arith.constant 0 : index
    %c0_2 = arith.constant 0 : index
    %c0_3 = arith.constant 0 : index
    %8 = vector.load %arg1[%c0_1, %c0_2, %c0_3] : memref<2x16x128xi32, #tpu.memory_space<vmem>>, vector<1x16x128xi32>
    %9 = vector.shape_cast %8 : vector<1x16x128xi32> to vector<16x128xi32>
    %10 = vector.shape_cast %7 : vector<16x128xi32> to vector<1x16x128xi32>
    tpu.vector_store %arg1[%c0_1, %c0_2, %c0_3], %10 {strides = array<i32>} : memref<2x16x128xi32, #tpu.memory_space<vmem>>, vector<1x16x128xi32>,
    %c2_i32_4 = arith.constant 2 : i32
    %11 = vector.broadcast %c2_i32_4 : i32 to vector<16x128xi32>
    %12 = arith.shli %7, %11 : vector<16x128xi32>
    %13 = arith.subi %0, %12 : vector<16x128xi32>
    %c1 = arith.constant 1 : index
    %c0_5 = arith.constant 0 : index
    %c0_6 = arith.constant 0 : index
    %14 = vector.load %arg1[%c1, %c0_5, %c0_6] : memref<2x16x128xi32, #tpu.memory_space<vmem>>, vector<1x16x128xi32>
    %15 = vector.shape_cast %14 : vector<1x16x128xi32> to vector<16x128xi32>
    %16 = vector.shape_cast %13 : vector<16x128xi32> to vector<1x16x128xi32>
    tpu.vector_store %arg1[%c1, %c0_5, %c0_6], %16 {strides = array<i32>} : memref<2x16x128xi32, #tpu.memory_space<vmem>>, vector<1x16x128xi32>,
    return
  }
}

</mosaic_0001>

<bundles_post_ra>
// kernel: tpu_custom_call.1
= control target key start
LH: loop header
LB: loop body
LE: loop exit
PB: predicated region body
PF: predicated region fallthrough
CT: control target
= control target key end

     0   :  { %6 = vsyncpa [#allocation3], 0  ;;  %s155_s0 = inlined_call_operand.hbm [shape: s32[16,128], index: 0, kind: input, shape index: {}]   ;;  %s156_s1 = inlined_call_operand.hbm [shape: s32[2,16,128], index: 1, kind: output, shape index: {}]  }
   0x1   :  { %7 = vsyncpa [#allocation4], 0  ;;  %s111_s6 = smov [#allocation2]   ;;  %s63_s10 = scalar_lea.hbm %s155_s0, 256 }
   0x2   :  { %s13_s7 = sshll.u32 %s111_s6, 4  ;;  %p64_p0 = scmp.ne.s32.totalorder %s155_s0, %s63_s10  ;;  %s14_s7 = int_to_ptr.vmem [resolvable:$true] %s13_s7 }
   0x3   :  { %p67_p1 = scmp.lt.u32.totalorder %s63_s10, %s155_s0 }
   0x5   :  { %p69_p2 = pnand %p67_p1, %p64_p0 }
   0x7   :  { %72 = shalt.err (!%p69_p2)
}
   0x8   :  { %s73_s15 = scalar_lea.vmem %s14_s7, 256  ;;  %p78_p4 = scmp.lt.s32.totalorder %s14_s7, %s14_s7 }
   0x9   :  { %p74_p3 = scmp.ne.s32.totalorder %s14_s7, %s73_s15  ;;  %p79_p5 = scmp.lt.s32.totalorder %s73_s15, %s73_s15 }
   0xb   :  { %p80_p6 = por %p79_p5, %p78_p4 }
   0xd   :  { %p81_p7 = pnand %p80_p6, %p74_p3 }
   0xf   :  { %84 = shalt.err (!%p81_p7)
}
  0x10   :  { %s112_s16 = smov 128   ;;  %s113_s17 = smov 8  }
  0x11   :  { %19 = dma.hbm_to_vmem [thread:$0]  %s155_s0, 256, %s14_s7, [#allocation3], %s112_s16, %s112_s16, %s113_s17  }
  0x12   :  { %107 = dma.done.wait [#allocation3], 256  }
  0x13   :  { %108 = vsyncadd [#allocation3], 4294967040  ;;  %v23_v0 = vld [vmem:[#allocation2] sm:$0xff]  ;;  %v24_v1 = vld [vmem:[#allocation2 + $0x8] sm:$0xff]  ;;  %s114_s20 = smov [#allocation5]  }
  0x14   :  { %v25_v2 = vshra.s32 %v23_v0, 31  ;;  %v26_v3 = vshra.s32 %v24_v1, 31  ;;  %s47_s21 = sshll.u32 %s114_s20, 4  ;;  %s48_s21 = int_to_ptr.vmem [resolvable:$true] %s47_s21 }
  0x15   :  { %s85_s0 = scalar_lea.vmem %s48_s21, 512  ;;  %p90_p9 = scmp.lt.s32.totalorder %s48_s21, %s48_s21 }
  0x16   :  { %v27_v4 = vand.u32 3, %v25_v2  ;;  %v28_v5 = vand.u32 3, %v26_v3  ;;  %p86_p8 = scmp.ne.s32.totalorder %s48_s21, %s85_s0  ;;  %p91_p10 = scmp.lt.s32.totalorder %s85_s0, %s85_s0 }
  0x18   :  { %v29_v6 = vadd.s32 %v27_v4, %v23_v0  ;;  %v30_v7 = vadd.s32 %v28_v5, %v24_v1  ;;  %p92_p11 = por %p91_p10, %p90_p9 }
  0x1a   :  { %v31_v8 = vshra.s32 %v29_v6, 2  ;;  %v32_v9 = vshra.s32 %v30_v7, 2  ;;  %p93_p12 = pnand %p92_p11, %p86_p8 }
  0x1c   :  { %33 = vst [vmem:[#allocation5] sm:$0xff] %v31_v8  ;;  %34 = vst [vmem:[#allocation5 + $0x8] sm:$0xff] %v32_v9  ;;  %v35_v10 = vshll.u32 %v31_v8, 2  ;;  %v36_v11 = vshll.u32 %v32_v9, 2 }
  0x1e   :  { %v37_v12 = vsub.s32 %v23_v0, %v35_v10  ;;  %v38_v13 = vsub.s32 %v24_v1, %v36_v11 }
  0x20   :  { %40 = vst [vmem:[#allocation5 + $0x10] sm:$0xff] %v37_v12  ;;  %41 = vst [vmem:[#allocation5 + $0x18] sm:$0xff] %v38_v13 }
  0x21   :  { %96 = shalt.err (!%p93_p12)
}
  0x22   :  { %s97_s24 = scalar_lea.hbm %s156_s1, 512 }
  0x23   :  { %p98_p13 = scmp.ne.s32.totalorder %s156_s1, %s97_s24  ;;  %p101_p0 = scmp.lt.u32.totalorder %s97_s24, %s156_s1 }
  0x25   :  { %p103_p1 = pnand %p101_p0, %p98_p13 }
  0x27   :  { %106 = shalt.err (!%p103_p1)
}
  0x28   :  { %53 = dma.vmem_to_hbm [thread:$0]  %s48_s21, 512, %s156_s1, [#allocation4], %s112_s16, %s112_s16, %s113_s17  }
  0x29   :  { %109 = dma.done.wait [#allocation4], 512  }
  0x2a   :  { %110 = vsyncadd [#allocation4], 4294966784 }
  0x2b   :  { %57 = vsyncpa [#allocation3], 1 }
  0x2c   :  { %58 = vsyncpa [#allocation4], 1 }

</bundles_post_ra>
